<compile_context>
chip_gen: v5e
topology: v5e:2x2
jax: 0.10.0
libtpu: 0.0.40
codegen_flags: <defaults>
</compile_context>

<pallas_src>
import jax
import jax.numpy as jnp
import numpy as np
from jax.experimental import pallas as pl
from jax.experimental.pallas import tpu as pltpu


def _default_num_cores():
    """Best-effort TensorCores-per-device guess (v7x/v5p/v4 megacore -> 2)."""
    try:
        kind = jax.devices()[0].device_kind.lower()
    except Exception:
        return 1
    single = ("v5e", "v5 lite", "v5litepod", "v6e", "v6 lite", "v2", "v3")
    return 1 if any(tag in kind for tag in single) else 2


def _make_kernel(*, tile, c_packed, np_rows, steps_per_core, logits, need_mask):
    """Per-block confusion partial sums, accumulated into a (32, c_packed) output slab
    per core: rows [0:8)=tp, [8:16)=fp, [16:24)=fn, [24:32)=tn (sublane-partial)."""
    groups = tile // 8

    def kernel(yp_ref, yt_ref, out_ref):
        core = pl.program_id(0)
        i = pl.program_id(1)

        @pl.when(i == 0)
        def _init():
            out_ref[...] = jnp.zeros_like(out_ref)

        yp = yp_ref[...].astype(jnp.float32)
        yt = yt_ref[...].astype(jnp.float32)
        if logits:
            # sigmoid(x) == 0.5*tanh(0.5*x) + 0.5 : one EUP push, mul/add ride VALU.
            yp = 0.5 * jnp.tanh(0.5 * yp) + 0.5

        if need_mask:
            # Valid packed-row count for this (possibly ragged / clamped) block.
            start = (core * steps_per_core + i) * tile
            rows_valid = np_rows - start                     # may be <=0 or > tile
            rid = jax.lax.broadcasted_iota(jnp.int32, (tile, c_packed), 0)
            m = rid < rows_valid
            yp = jnp.where(m, yp, 0.0)                       # where() also kills NaNs
            yt = jnp.where(m, yt, 0.0)
            ones = m.astype(jnp.float32)
        else:
            ones = 1.0

        # Element-wise confusion terms (exact for {0,1} labels).
        tp_e = yt * yp
        fp_e = yp - tp_e            # (1 - yt) * yp
        fn_e = yt - tp_e            # yt * (1 - yp)
        tn_e = ones - yt - fp_e     # (1 - yt) * (1 - yp); 0 on masked rows

        def red(x):                 # sum across row-vreg groups only (pure VALU adds)
            return x.reshape(groups, 8, c_packed).sum(axis=0)

        out_ref[0:8, :] += red(tp_e)
        out_ref[8:16, :] += red(fp_e)
        out_ref[16:24, :] += red(fn_e)
        out_ref[24:32, :] += red(tn_e)

    return kernel


def bal_accuracy_loss(y_pred, y_true, *, epsilon=1e-07, logits=True,
                      harmonic_mean=True, max_rows_per_block=2048, num_cores=None):
    """y_pred, y_true: (N, C). Returns scalar f32 loss = 1 - mean(balanced accuracy).

    The kernel computes everything in f32 internally, so bf16 predictions and
    bf16 / int8 labels are welcome and halve/quarter HBM traffic."""
    assert y_pred.ndim == 2 and y_true.ndim == 2
    N, C = y_pred.shape
    assert y_true.shape == (N, C)

    if num_cores is None:
        num_cores = _default_num_cores()

    # Lane packing: fold k consecutive samples into the lane dim so vector ops use
    # (up to) all 128 lanes when C is narrow.
    k = max(1, 128 // C)
    c_packed = k * C
    n_main = (N // k) * k            # rows handled by the packed kernel
    np_rows = n_main // k            # packed rows
    leftover = N - n_main            # < k rows folded in outside the kernel

    if np_rows > 0:
        # Row tile: as large as fits a conservative VMEM budget for the
        # double-buffered input blocks (2 inputs x 2 buffers).
        bytes_per_row = c_packed * (jnp.dtype(y_pred.dtype).itemsize
                                    + jnp.dtype(y_true.dtype).itemsize)
        budget = 12 * 1024 * 1024
        cap = min(int(max_rows_per_block), budget // (2 * bytes_per_row))
        cap = max(64, (cap // 8) * 8)
        tile = min(cap, ((np_rows + 7) // 8) * 8)

        total_blocks = -(-np_rows // tile)
        cores = num_cores if (num_cores > 1 and total_blocks > 1) else 1
        steps_per_core = -(-total_blocks // cores)
        last_block = total_blocks - 1
        need_mask = (cores * steps_per_core * tile) != np_rows

        if k == 1:
            yp2, yt2 = y_pred, y_true
        else:
            yp_main = y_pred if leftover == 0 else y_pred[:n_main]
            yt_main = y_true if leftover == 0 else y_true[:n_main]
            yp2 = yp_main.reshape(np_rows, c_packed)
            yt2 = yt_main.reshape(np_rows, c_packed)

        def in_map(core, i):
            b = core * steps_per_core + i
            return (jnp.minimum(b, last_block), 0)   # clamp: DMA stays in bounds

        kernel = _make_kernel(tile=tile, c_packed=c_packed, np_rows=np_rows,
                              steps_per_core=steps_per_core, logits=logits,
                              need_mask=need_mask)

        parts = pl.pallas_call(
            kernel,
            out_shape=jax.ShapeDtypeStruct((cores * 32, c_packed), jnp.float32),
            grid=(cores, steps_per_core),
            in_specs=[pl.BlockSpec((tile, c_packed), in_map),
                      pl.BlockSpec((tile, c_packed), in_map)],
            out_specs=pl.BlockSpec((32, c_packed), lambda core, i: (core, 0)),
            compiler_params=pltpu.CompilerParams(
                dimension_semantics=("parallel", "arbitrary"),
                vmem_limit_bytes=32 * 1024 * 1024),
        )(yp2, yt2)

        # Combine cores + sublane partials, then fold the k lane copies per class.
        sums = parts.reshape(cores, 4, 8, c_packed).sum(axis=(0, 2))   # (4, c_packed)
        sums = sums.reshape(4, k, C).sum(axis=1)                       # (4, C)
    else:
        sums = jnp.zeros((4, C), jnp.float32)

    if leftover:
        # < k trailing rows that did not fit the packing reshape: tiny, plain JAX.
        yp_t = y_pred[n_main:].astype(jnp.float32)
        if logits:
            yp_t = jax.nn.sigmoid(yp_t)
        yt_t = y_true[n_main:].astype(jnp.float32)
        tp_t = (yt_t * yp_t).sum(axis=0)
        fp_t = ((1.0 - yt_t) * yp_t).sum(axis=0)
        fn_t = (yt_t * (1.0 - yp_t)).sum(axis=0)
        tn_t = ((1.0 - yt_t) * (1.0 - yp_t)).sum(axis=0)
        sums = sums + jnp.stack([tp_t, fp_t, fn_t, tn_t], axis=0)

    tp, fp, fn, tn = sums[0], sums[1], sums[2], sums[3]
    recall = tp / (tp + fn + epsilon)
    spec = tn / (tn + fp + epsilon)
    if harmonic_mean:
        acc = 2.0 * (recall * spec) / (recall + spec + epsilon)
    else:
        acc = 0.5 * (recall + spec)
    acc = jnp.clip(acc, epsilon, 1.0 - epsilon)
    return 1.0 - jnp.mean(acc)


def _reference(y_pred, y_true, *, epsilon=1e-07, logits=True, harmonic_mean=True):
    yp = y_pred.astype(jnp.float32)
    if logits:
        yp = jax.nn.sigmoid(yp)
    yt = y_true.astype(jnp.float32)
    tp = (yt * yp).sum(axis=0)
    tn = ((1 - yt) * (1 - yp)).sum(axis=0)
    fp = ((1 - yt) * yp).sum(axis=0)
    fn = (yt * (1 - yp)).sum(axis=0)
    recall = tp / (tp + fn + epsilon)
    spec = tn / (tn + fp + epsilon)
    if harmonic_mean:
        acc = 2 * (recall * spec) / (recall + spec + epsilon)
    else:
        acc = (recall + spec) / 2
    acc = jnp.clip(acc, epsilon, 1 - epsilon)
    return 1.0 - acc.mean()


if __name__ == "__main__":
    key = jax.random.PRNGKey(0)
    k1, k2, k3, k4 = jax.random.split(key, 4)

    # Small shape: lane packing (C=32 -> k=4 -> 128-wide packed rows), single block.
    N, C = 64, 32
    y_pred = jax.random.normal(k1, (N, C), dtype=jnp.float32)            # raw logits
    y_true = (jax.random.uniform(k2, (N, C)) > 0.5).astype(jnp.float32)  # binary labels
    loss = jax.block_until_ready(bal_accuracy_loss(y_pred, y_true))
    ref = jax.block_until_ready(_reference(y_pred, y_true))
    assert np.isclose(np.asarray(loss), np.asarray(ref), rtol=1e-5, atol=1e-6), (loss, ref)

    # Ragged shape: C=40 -> k=3 (packed width 120), one leftover row folded outside
    # the kernel, multi-block masked reduction, forced 2-way "parallel" grid axis.
    N2, C2 = 3001, 40
    y_pred2 = jax.random.normal(k3, (N2, C2), dtype=jnp.float32)
    y_true2 = (jax.random.uniform(k4, (N2, C2)) > 0.5).astype(jnp.float32)
    loss2 = jax.block_until_ready(
        bal_accuracy_loss(y_pred2, y_true2, max_rows_per_block=256, num_cores=2))
    ref2 = jax.block_until_ready(_reference(y_pred2, y_true2))
    assert np.isclose(np.asarray(loss2), np.asarray(ref2), rtol=1e-4, atol=1e-5), (loss2, ref2)

    # Same data through the default (auto-tile, auto-core) path.
    loss3 = jax.block_until_ready(bal_accuracy_loss(y_pred2, y_true2))
    assert np.isclose(np.asarray(loss3), np.asarray(ref2), rtol=1e-4, atol=1e-5), (loss3, ref2)

    print("KERNEL_OK")
</pallas_src>

<mosaic_0001>
module attributes {stable_mosaic.version = 11 : i64} {
  func.func @kernel(%arg0: i32, %arg1: i32, %arg2: memref<16x128xf32, #tpu.memory_space<vmem>>, %arg3: memref<16x128xf32, #tpu.memory_space<vmem>>, %arg4: memref<32x128xf32, #tpu.memory_space<vmem>>) attributes {dimension_semantics = [#tpu.dimension_semantics<parallel>, #tpu.dimension_semantics<arbitrary>], iteration_bounds = array<i64: 1, 1>, scalar_prefetch = 0 : i64, scratch_operands = 0 : i64, tpu.core_type = #tpu.core_type<tc>, window_params = [{transform_indices = @transform_0, window_bounds = array<i64: 16, 128>}, {transform_indices = @transform_1, window_bounds = array<i64: 16, 128>}, {transform_indices = @transform_2, window_bounds = array<i64: 32, 128>}]} {
    %c0_i32 = arith.constant 0 : i32
    %0 = arith.cmpi eq, %arg1, %c0_i32 : i32
    %1 = arith.extui %0 : i1 to i32
    %c0_i32_0 = arith.constant 0 : i32
    %2 = arith.cmpi ne, %1, %c0_i32_0 : i32
    scf.if %2 {
      %cst_24 = arith.constant 0.000000e+00 : f32
      %38 = vector.broadcast %cst_24 : f32 to vector<32x128xf32>
      %c0_25 = arith.constant 0 : index
      %c0_26 = arith.constant 0 : index
      %39 = vector.load %arg4[%c0_25, %c0_26] : memref<32x128xf32, #tpu.memory_space<vmem>>, vector<32x128xf32>
      tpu.vector_store %arg4[%c0_25, %c0_26], %38 {strides = array<i32>} : memref<32x128xf32, #tpu.memory_space<vmem>>, vector<32x128xf32>,
    } else {
    }
    %c0 = arith.constant 0 : index
    %c0_1 = arith.constant 0 : index
    %3 = vector.load %arg2[%c0, %c0_1] : memref<16x128xf32, #tpu.memory_space<vmem>>, vector<16x128xf32>
    %c0_2 = arith.constant 0 : index
    %c0_3 = arith.constant 0 : index
    %4 = vector.load %arg3[%c0_2, %c0_3] : memref<16x128xf32, #tpu.memory_space<vmem>>, vector<16x128xf32>
    %cst = arith.constant 5.000000e-01 : f32
    %5 = vector.broadcast %cst : f32 to vector<16x128xf32>
    %6 = arith.mulf %5, %3 : vector<16x128xf32>
    %7 = math.tanh %6 : vector<16x128xf32>
    %cst_4 = arith.constant 5.000000e-01 : f32
    %8 = vector.broadcast %cst_4 : f32 to vector<16x128xf32>
    %9 = arith.mulf %8, %7 : vector<16x128xf32>
    %cst_5 = arith.constant 5.000000e-01 : f32
    %10 = vector.broadcast %cst_5 : f32 to vector<16x128xf32>
    %11 = arith.addf %9, %10 : vector<16x128xf32>
    %12 = arith.mulf %4, %11 : vector<16x128xf32>
    %13 = arith.subf %11, %12 : vector<16x128xf32>
    %14 = arith.subf %4, %12 : vector<16x128xf32>
    %cst_6 = arith.constant 1.000000e+00 : f32
    %15 = vector.broadcast %cst_6 : f32 to vector<16x128xf32>
    %16 = arith.subf %15, %4 : vector<16x128xf32>
    %17 = arith.subf %16, %13 : vector<16x128xf32>
    %c0_7 = arith.constant 0 : index
    %c0_8 = arith.constant 0 : index
    %18 = vector.load %arg4[%c0_7, %c0_8] : memref<32x128xf32, #tpu.memory_space<vmem>>, vector<8x128xf32>
    %19 = vector.shape_cast %12 : vector<16x128xf32> to vector<2x8x128xf32>
    %cst_9 = arith.constant dense<0.000000e+00> : vector<8x128xf32>
    %20 = vector.multi_reduction <add>, %19, %cst_9 [0] : vector<2x8x128xf32> to vector<8x128xf32>
    %21 = arith.addf %18, %20 : vector<8x128xf32>
    %c0_10 = arith.constant 0 : index
    %c0_11 = arith.constant 0 : index
    %22 = vector.load %arg4[%c0_10, %c0_11] : memref<32x128xf32, #tpu.memory_space<vmem>>, vector<8x128xf32>
    tpu.vector_store %arg4[%c0_10, %c0_11], %21 {strides = array<i32>} : memref<32x128xf32, #tpu.memory_space<vmem>>, vector<8x128xf32>,
    %c8 = arith.constant 8 : index
    %c0_12 = arith.constant 0 : index
    %23 = vector.load %arg4[%c8, %c0_12] : memref<32x128xf32, #tpu.memory_space<vmem>>, vector<8x128xf32>
    %24 = vector.shape_cast %13 : vector<16x128xf32> to vector<2x8x128xf32>
    %cst_13 = arith.constant dense<0.000000e+00> : vector<8x128xf32>
    %25 = vector.multi_reduction <add>, %24, %cst_13 [0] : vector<2x8x128xf32> to vector<8x128xf32>
    %26 = arith.addf %23, %25 : vector<8x128xf32>
    %c8_14 = arith.constant 8 : index
    %c0_15 = arith.constant 0 : index
    %27 = vector.load %arg4[%c8_14, %c0_15] : memref<32x128xf32, #tpu.memory_space<vmem>>, vector<8x128xf32>
    tpu.vector_store %arg4[%c8_14, %c0_15], %26 {strides = array<i32>} : memref<32x128xf32, #tpu.memory_space<vmem>>, vector<8x128xf32>,
    %c16 = arith.constant 16 : index
    %c0_16 = arith.constant 0 : index
    %28 = vector.load %arg4[%c16, %c0_16] : memref<32x128xf32, #tpu.memory_space<vmem>>, vector<8x128xf32>
    %29 = vector.shape_cast %14 : vector<16x128xf32> to vector<2x8x128xf32>
    %cst_17 = arith.constant dense<0.000000e+00> : vector<8x128xf32>
    %30 = vector.multi_reduction <add>, %29, %cst_17 [0] : vector<2x8x128xf32> to vector<8x128xf32>
    %31 = arith.addf %28, %30 : vector<8x128xf32>
    %c16_18 = arith.constant 16 : index
    %c0_19 = arith.constant 0 : index
    %32 = vector.load %arg4[%c16_18, %c0_19] : memref<32x128xf32, #tpu.memory_space<vmem>>, vector<8x128xf32>
    tpu.vector_store %arg4[%c16_18, %c0_19], %31 {strides = array<i32>} : memref<32x128xf32, #tpu.memory_space<vmem>>, vector<8x128xf32>,
    %c24 = arith.constant 24 : index
    %c0_20 = arith.constant 0 : index
    %33 = vector.load %arg4[%c24, %c0_20] : memref<32x128xf32, #tpu.memory_space<vmem>>, vector<8x128xf32>
    %34 = vector.shape_cast %17 : vector<16x128xf32> to vector<2x8x128xf32>
    %cst_21 = arith.constant dense<0.000000e+00> : vector<8x128xf32>
    %35 = vector.multi_reduction <add>, %34, %cst_21 [0] : vector<2x8x128xf32> to vector<8x128xf32>
    %36 = arith.addf %33, %35 : vector<8x128xf32>
    %c24_22 = arith.constant 24 : index
    %c0_23 = arith.constant 0 : index
    %37 = vector.load %arg4[%c24_22, %c0_23] : memref<32x128xf32, #tpu.memory_space<vmem>>, vector<8x128xf32>
    tpu.vector_store %arg4[%c24_22, %c0_23], %36 {strides = array<i32>} : memref<32x128xf32, #tpu.memory_space<vmem>>, vector<8x128xf32>,
    return
  }
  func.func @transform_0(%arg0: i32, %arg1: i32) -> (i32, i32) {
    %c1_i32 = arith.constant 1 : i32
    %0 = arith.muli %arg0, %c1_i32 : i32
    %1 = arith.addi %0, %arg1 : i32
    %c0_i32 = arith.constant 0 : i32
    %2 = arith.minsi %1, %c0_i32 : i32
    %c0_i32_0 = arith.constant 0 : i32
    %c0_i32_1 = arith.constant 0 : i32
    return %2, %c0_i32_0 : i32, i32
  }
  func.func @transform_1(%arg0: i32, %arg1: i32) -> (i32, i32) {
    %c1_i32 = arith.constant 1 : i32
    %0 = arith.muli %arg0, %c1_i32 : i32
    %1 = arith.addi %0, %arg1 : i32
    %c0_i32 = arith.constant 0 : i32
    %2 = arith.minsi %1, %c0_i32 : i32
    %c0_i32_0 = arith.constant 0 : i32
    %c0_i32_1 = arith.constant 0 : i32
    return %2, %c0_i32_0 : i32, i32
  }
  func.func @transform_2(%arg0: i32, %arg1: i32) -> (i32, i32) {
    %c0_i32 = arith.constant 0 : i32
    %c0_i32_0 = arith.constant 0 : i32
    return %arg0, %c0_i32 : i32, i32
  }
}

</mosaic_0001>

<bundles_post_ra>
// kernel: tpu_custom_call.1
= control target key start
LH: loop header
LB: loop body
LE: loop exit
PB: predicated region body
PF: predicated region fallthrough
CT: control target
= control target key end

     0   :  { %7 = vsyncpa [#allocation3], 0  ;;  %s260_s0 = inlined_call_operand.hbm [shape: f32[16,128], index: 0, kind: input, shape index: {}]   ;;  %s261_s1 = inlined_call_operand.hbm [shape: f32[16,128], index: 1, kind: input, shape index: {}]   ;;  %s262_s2 = inlined_call_operand.hbm [shape: f32[32,128], index: 2, kind: output, shape index: {}]  }
   0x1   :  { %8 = vsyncpa [#allocation6], 0 }
   0x2   :  { %9 = vsyncpa [#allocation4], 0  ;;  %s20_s11 = sshll.u32 %s260_s0, 4  ;;  %s222_s12 = smov [#allocation2]   ;;  %s21_s11 = int_to_ptr.hbm [resolvable:$true] %s20_s11 }
   0x3   :  { %s22_s13 = sshll.u32 %s222_s12, 4  ;;  %s39_s16 = sshll.u32 %s261_s1, 4  ;;  %s23_s13 = int_to_ptr.vmem [resolvable:$true] %s22_s13  ;;  %s40_s16 = int_to_ptr.hbm [resolvable:$true] %s39_s16 }
   0x4   :  { %s223_s17 = smov 128   ;;  %s224_s18 = smov 8  }
   0x5   :  { %28 = dma.hbm_to_vmem [thread:$0]  %s21_s11, 256, %s23_s13, [#allocation3], %s223_s17, %s223_s17, %s224_s18  }
   0x6   :  { %s225_s19 = smov [#allocation5]  }
   0x7   :  { %s41_s20 = sshll.u32 %s225_s19, 4  ;;  %s42_s20 = int_to_ptr.vmem [resolvable:$true] %s41_s20 }
   0x8   :  { %47 = dma.hbm_to_vmem [thread:$0]  %s40_s16, 256, %s42_s20, [#allocation6], %s223_s17, %s223_s17, %s224_s18  }
   0x9   :  { %216 = dma.done.wait [#allocation3], 256  }
   0xa   :  { %217 = vsyncadd [#allocation3], 4294967040 }
   0xb   :  { %218 = dma.done.wait [#allocation6], 256  }
   0xc   :  { %219 = vsyncadd [#allocation6], 4294967040  ;;  %v72_v0 = vld [vmem:[#allocation2] sm:$0xff]  ;;  %v73_v1 = vld [vmem:[#allocation2 + $0x8] sm:$0xff]  ;;  %s226_s0 = smov [#allocation7]   ;;  %s116_s23 = sshll.u32 %s262_s2, 4  ;;  %s117_s23 = int_to_ptr.hbm [resolvable:$true] %s116_s23 }
   0xd   :  { %v76_v2 = vmul.f32 0.5, %v72_v0  ;;  %v77_v3 = vmul.f32 0.5, %v73_v1  ;;  %v74_v7 = vld [vmem:[#allocation5] sm:$0xff]  ;;  %v75_v9 = vld [vmem:[#allocation5 + $0x8] sm:$0xff]  ;;  %s114_s1 = sshll.u32 %s226_s0, 4  ;;  %s115_s1 = int_to_ptr.vmem [resolvable:$true] %s114_s1 }
   0xe   :  { %v90_v13 = vsub.f32 1.0, %v74_v7  ;;  %v91_v15 = vsub.f32 1.0, %v75_v9 }
   0xf   :  { %140 = vtanh.f32 %v76_v2 }
  0x10   :  { %142 = vtanh.f32 %v77_v3 }
  0x15   :  { %v141_v4 = vpop.eup %140 }
  0x16   :  { %v143_v5 = vpop.eup %142  ;;  %v80_v6 = vmul.f32 0.5, %v141_v4 }
  0x17   :  { %v81_v8 = vmul.f32 0.5, %v143_v5 }
  0x18   :  { %v82_v10 = vadd.f32 0.5, %v80_v6 }
  0x19   :  { %v83_v11 = vadd.f32 0.5, %v81_v8 }
  0x1a   :  { %v84_v12 = vmul.f32 %v82_v10, %v74_v7 }
  0x1b   :  { %v85_v14 = vmul.f32 %v83_v11, %v75_v9 }
  0x1c   :  { %v86_v16 = vsub.f32 %v82_v10, %v84_v12  ;;  %v88_v17 = vsub.f32 %v74_v7, %v84_v12 }
  0x1d   :  { %v95_v18 = vadd.f32 %v85_v14, %v84_v12  ;;  %v87_v19 = vsub.f32 %v83_v11, %v85_v14  ;;  %v89_v20 = vsub.f32 %v75_v9, %v85_v14 }
  0x1e   :  { %v92_v21 = vsub.f32 %v90_v13, %v86_v16 }
  0x1f   :  { %v99_v22 = vadd.f32 %v87_v19, %v86_v16  ;;  %v103_v23 = vadd.f32 %v89_v20, %v88_v17  ;;  %v93_v24 = vsub.f32 %v91_v15, %v87_v19  ;;  %97 = vst [vmem:[#allocation7] sm:$0xff] %v95_v18 }
  0x21   :  { %v107_v25 = vadd.f32 %v93_v24, %v92_v21  ;;  %101 = vst [vmem:[#allocation7 + $0x8] sm:$0xff] %v99_v22 }
  0x22   :  { %105 = vst [vmem:[#allocation7 + $0x10] sm:$0xff] %v103_v23 }
  0x23   :  { %109 = vst [vmem:[#allocation7 + $0x18] sm:$0xff] %v107_v25 }
  0x24   :  { %122 = dma.vmem_to_hbm [thread:$0]  %s115_s1, 512, %s117_s23, [#allocation4], %s223_s17, %s223_s17, %s224_s18  }
  0x25   :  { %220 = dma.done.wait [#allocation4], 512  }
  0x26   :  { %221 = vsyncadd [#allocation4], 4294966784 }
  0x27   :  { %127 = vsyncpa [#allocation3], 1 }
  0x28   :  { %128 = vsyncpa [#allocation6], 1 }
  0x29   :  { %129 = vsyncpa [#allocation4], 1 }

</bundles_post_ra>
